<compile_context>
chip_gen: v7x
topology: tpu7x:2x2x1
jax: 0.10.0
libtpu: 0.0.40
codegen_flags: <defaults>
</compile_context>

<pallas_src>
import jax
import jax.numpy as jnp
from jax.experimental import pallas as pl
from jax.experimental.pallas import tpu as pltpu


def _down_skip_kernel(x_ref, halo_ref, w_ref, o_ref):
    # x_ref:    (2*TH, Wo+1, 2*Cin)  packed pairs of adjacent padded columns
    #                                 (padded rows [2*TH*t, 2*TH*(t+1)))
    # halo_ref: (1,    Wo+1, 2*Cin)  padded row 2*TH*(t+1) (the +1 row halo)
    # w_ref:    (Cin, Cout)          1x1-conv weight, pre-scaled by 1/9
    # o_ref:    (TH, Wo, Cout)
    TH, Wo, Cout = o_ref.shape
    Cin = w_ref.shape[0]

    def wtaps(v):
        # v: (R, Wo+1, 2*Cin) in f32.  packed col c = (padded col 2c, 2c+1).
        a = v[:, :Wo, :Cin]    # padded col 2c
        b = v[:, :Wo, Cin:]    # padded col 2c+1
        c = v[:, 1:, :Cin]     # padded col 2c+2
        return (a + b) + c     # (R, Wo, Cin)

    rows = wtaps(x_ref[...].astype(jnp.float32))      # (2*TH, Wo, Cin)
    hrow = wtaps(halo_ref[...].astype(jnp.float32))   # (1,    Wo, Cin)

    # H-direction 3-tap (stride 2): output row r uses padded rows 2r, 2r+1, 2r+2.
    r4 = rows.reshape(TH, 2, Wo, Cin)
    top = r4[:, 0]                                    # padded rows 2r
    mid = r4[:, 1]                                    # padded rows 2r+1
    if TH > 1:
        bot = jnp.concatenate([top[1:], hrow], axis=0)  # padded rows 2r+2
    else:
        bot = hrow
    pooled = (top + mid) + bot                        # sum of 9 taps (f32)

    # 1x1 conv on the MXU; the 1/9 average scale is folded into w_ref.
    out = jnp.dot(
        pooled.reshape(TH * Wo, Cin),
        w_ref[...].astype(jnp.float32),
        preferred_element_type=jnp.float32,
    )                                                 # (TH*Wo, Cout)
    o_ref[...] = out.reshape(TH, Wo, Cout).astype(o_ref.dtype)


def down_skip(x_nchw, weight, *, tile_rows=None):
    """x_nchw: (B, Cin, H, W). weight: (Cout, Cin, 1, 1).

    Equivalent to nn.AvgPool2d(3, 2, 1) (count_include_pad=True) followed by
    nn.Conv2d(Cin, Cout, 1, bias=False).  Returns (B, Cout, Ho, Wo).
    """
    B, Cin, H, W = x_nchw.shape
    Cout = weight.shape[0]
    Ho = (H - 1) // 2 + 1
    Wo = (W - 1) // 2 + 1

    # ---- pick a row-tile size that keeps the input block around ~2 MiB -----
    itemsize = jnp.dtype(x_nchw.dtype).itemsize
    bytes_per_out_row = 4 * (Wo + 1) * Cin * itemsize   # 2 input rows, packed
    if tile_rows is None:
        TH = int(max(1, min(Ho, (2 * 1024 * 1024) // max(1, bytes_per_out_row))))
    else:
        TH = int(max(1, min(Ho, tile_rows)))
    nt = pl.cdiv(Ho, TH)

    # ---- layout glue (pure data movement, fused by XLA under jit) ----------
    # NCHW -> NHWC, zero-pad: top/left by 1, bottom so that padded rows
    # 0..2*TH*nt exist (covers the pooling pad + halo row of the last tile),
    # right so that the padded width is exactly 2*(Wo+1).
    x = jnp.transpose(x_nchw, (0, 2, 3, 1))
    pad_b = 2 * TH * nt - H            # >= 0
    pad_r = 2 * Wo + 1 - W             # 1 (even W) or 2 (odd W)
    xp = jnp.pad(x, ((0, 0), (1, pad_b), (1, pad_r), (0, 0)))
    Hp = H + 1 + pad_b

    # Pack adjacent column pairs into the channel dim (contiguous -> free):
    # packed[..., c, 0:Cin] = padded col 2c, packed[..., c, Cin:] = col 2c+1.
    xpk = xp.reshape(B, Hp, Wo + 1, 2 * Cin)

    # 1x1-conv weight, transposed, with the 1/9 average folded in.
    w2 = (jnp.transpose(weight.reshape(Cout, Cin), (1, 0)) * (1.0 / 9.0)).astype(
        jnp.float32
    )

    out_nhwc = pl.pallas_call(
        _down_skip_kernel,
        out_shape=jax.ShapeDtypeStruct((B, Ho, Wo, Cout), x_nchw.dtype),
        grid=(B, nt),
        in_specs=[
            # main block: 2*TH padded rows per output-row tile
            pl.BlockSpec((None, 2 * TH, Wo + 1, 2 * Cin),
                         lambda b, t: (b, t, 0, 0)),
            # halo block: the single padded row 2*TH*(t+1)
            pl.BlockSpec((None, 1, Wo + 1, 2 * Cin),
                         lambda b, t: (b, 2 * TH * (t + 1), 0, 0)),
            # weight stays resident
            pl.BlockSpec((Cin, Cout), lambda b, t: (0, 0)),
        ],
        out_specs=pl.BlockSpec((None, TH, Wo, Cout), lambda b, t: (b, t, 0, 0)),
        compiler_params=pltpu.CompilerParams(
            dimension_semantics=("parallel", "parallel"),
            vmem_limit_bytes=32 * 1024 * 1024,
        ),
    )(xpk, xpk, w2)

    return jnp.transpose(out_nhwc, (0, 3, 1, 2))       # back to NCHW


if __name__ == "__main__":
    key = jax.random.PRNGKey(0)
    kx, kw = jax.random.split(key)

    B, Cin, Cout, H, W = 2, 4, 8, 16, 16
    x = jax.random.normal(kx, (B, Cin, H, W), dtype=jnp.float32)
    # Conv2d(Cin, Cout, 1, 1, 0, bias=False) weight
    weight = jax.random.normal(kw, (Cout, Cin, 1, 1), dtype=jnp.float32) * 0.1

    down_skip_jit = jax.jit(down_skip)
    out = down_skip_jit(x, weight)
    out = jax.block_until_ready(out)

    # Plain-JAX reference: AvgPool2d(3,2,1) (count_include_pad=True) + 1x1 conv.
    pooled_ref = jax.lax.reduce_window(
        x, 0.0, jax.lax.add,
        (1, 1, 3, 3), (1, 1, 2, 2),
        ((0, 0), (0, 0), (1, 1), (1, 1)),
    ) / 9.0
    ref = jnp.einsum("bchw,oc->bohw", pooled_ref, weight.reshape(Cout, Cin))

    assert out.shape == ref.shape, (out.shape, ref.shape)
    assert jnp.allclose(out, ref, atol=1e-4, rtol=1e-4), float(
        jnp.max(jnp.abs(out - ref))
    )
    print("KERNEL_OK")
</pallas_src>

<mosaic_0001>
module attributes {stable_mosaic.version = 11 : i64} {
  func.func @_down_skip_kernel(%arg0: i32, %arg1: i32, %arg2: memref<1x16x9x8xf32, #tpu.memory_space<vmem>>, %arg3: memref<1x1x9x8xf32, #tpu.memory_space<vmem>>, %arg4: memref<4x8xf32, #tpu.memory_space<vmem>>, %arg5: memref<1x8x8x8xf32, #tpu.memory_space<vmem>>) attributes {dimension_semantics = [#tpu.dimension_semantics<parallel>, #tpu.dimension_semantics<parallel>], iteration_bounds = array<i64: 2, 1>, scalar_prefetch = 0 : i64, scratch_operands = 0 : i64, tpu.core_type = #tpu.core_type<tc>, window_params = [{transform_indices = @transform_0, window_bounds = array<i64: 1, 16, 9, 8>}, {transform_indices = @transform_1, window_bounds = array<i64: 1, 1, 9, 8>}, {pipeline_mode = #tpu.pipeline_mode<synchronous>, transform_indices = @transform_2, window_bounds = array<i64: 4, 8>}, {transform_indices = @transform_3, window_bounds = array<i64: 1, 8, 8, 8>}]} {
    %c0 = arith.constant 0 : index
    %c0_0 = arith.constant 0 : index
    %c0_1 = arith.constant 0 : index
    %c0_2 = arith.constant 0 : index
    %0 = vector.load %arg2[%c0, %c0_0, %c0_1, %c0_2] : memref<1x16x9x8xf32, #tpu.memory_space<vmem>>, vector<1x16x9x8xf32>
    %1 = vector.shape_cast %0 : vector<1x16x9x8xf32> to vector<16x9x8xf32>
    %2 = vector.extract_strided_slice %1 {offsets = [0, 0, 0], sizes = [16, 8, 4], strides = [1, 1, 1]} : vector<16x9x8xf32> to vector<16x8x4xf32>
    %3 = vector.extract_strided_slice %1 {offsets = [0, 0, 4], sizes = [16, 8, 4], strides = [1, 1, 1]} : vector<16x9x8xf32> to vector<16x8x4xf32>
    %4 = vector.extract_strided_slice %1 {offsets = [0, 1, 0], sizes = [16, 8, 4], strides = [1, 1, 1]} : vector<16x9x8xf32> to vector<16x8x4xf32>
    %5 = arith.addf %2, %3 : vector<16x8x4xf32>
    %6 = arith.addf %5, %4 : vector<16x8x4xf32>
    %c0_3 = arith.constant 0 : index
    %c0_4 = arith.constant 0 : index
    %c0_5 = arith.constant 0 : index
    %c0_6 = arith.constant 0 : index
    %7 = vector.load %arg3[%c0_3, %c0_4, %c0_5, %c0_6] : memref<1x1x9x8xf32, #tpu.memory_space<vmem>>, vector<1x1x9x8xf32>
    %8 = vector.shape_cast %7 : vector<1x1x9x8xf32> to vector<1x9x8xf32>
    %9 = vector.extract_strided_slice %8 {offsets = [0, 0, 0], sizes = [1, 8, 4], strides = [1, 1, 1]} : vector<1x9x8xf32> to vector<1x8x4xf32>
    %10 = vector.extract_strided_slice %8 {offsets = [0, 0, 4], sizes = [1, 8, 4], strides = [1, 1, 1]} : vector<1x9x8xf32> to vector<1x8x4xf32>
    %11 = vector.extract_strided_slice %8 {offsets = [0, 1, 0], sizes = [1, 8, 4], strides = [1, 1, 1]} : vector<1x9x8xf32> to vector<1x8x4xf32>
    %12 = arith.addf %9, %10 : vector<1x8x4xf32>
    %13 = arith.addf %12, %11 : vector<1x8x4xf32>
    %14 = vector.shape_cast %6 : vector<16x8x4xf32> to vector<8x2x8x4xf32>
    %15 = vector.extract_strided_slice %14 {offsets = [0, 0, 0, 0], sizes = [8, 1, 8, 4], strides = [1, 1, 1, 1]} : vector<8x2x8x4xf32> to vector<8x1x8x4xf32>
    %16 = vector.shape_cast %15 : vector<8x1x8x4xf32> to vector<8x8x4xf32>
    %17 = vector.extract_strided_slice %14 {offsets = [0, 1, 0, 0], sizes = [8, 1, 8, 4], strides = [1, 1, 1, 1]} : vector<8x2x8x4xf32> to vector<8x1x8x4xf32>
    %18 = vector.shape_cast %17 : vector<8x1x8x4xf32> to vector<8x8x4xf32>
    %19 = vector.extract_strided_slice %16 {offsets = [1, 0, 0], sizes = [7, 8, 4], strides = [1, 1, 1]} : vector<8x8x4xf32> to vector<7x8x4xf32>
    %20 = tpu.concatenate %19, %13 in 0 : vector<7x8x4xf32>, vector<1x8x4xf32> -> vector<8x8x4xf32>
    %21 = arith.addf %16, %18 : vector<8x8x4xf32>
    %22 = arith.addf %21, %20 : vector<8x8x4xf32>
    %23 = vector.shape_cast %22 : vector<8x8x4xf32> to vector<64x4xf32>
    %c0_7 = arith.constant 0 : index
    %c0_8 = arith.constant 0 : index
    %24 = vector.load %arg4[%c0_7, %c0_8] : memref<4x8xf32, #tpu.memory_space<vmem>>, vector<4x8xf32>
    %cst = arith.constant dense<0.000000e+00> : vector<64x8xf32>
    %25 = tpu.matmul %23, %24, %cst {dimension_numbers = #tpu.dot_dimension_numbers<[1], [0], [0], [1], [0, 0, 1, 1], [], []>} : vector<64x4xf32>, vector<4x8xf32>, vector<64x8xf32> -> vector<64x8xf32>
    %26 = vector.shape_cast %25 : vector<64x8xf32> to vector<8x8x8xf32>
    %c0_9 = arith.constant 0 : index
    %c0_10 = arith.constant 0 : index
    %c0_11 = arith.constant 0 : index
    %c0_12 = arith.constant 0 : index
    %27 = vector.load %arg5[%c0_9, %c0_10, %c0_11, %c0_12] : memref<1x8x8x8xf32, #tpu.memory_space<vmem>>, vector<1x8x8x8xf32>
    %28 = vector.shape_cast %27 : vector<1x8x8x8xf32> to vector<8x8x8xf32>
    %29 = vector.shape_cast %26 : vector<8x8x8xf32> to vector<1x8x8x8xf32>
    tpu.vector_store %arg5[%c0_9, %c0_10, %c0_11, %c0_12], %29 {strides = array<i32>} : memref<1x8x8x8xf32, #tpu.memory_space<vmem>>, vector<1x8x8x8xf32>,
    return
  }
  func.func @transform_0(%arg0: i32, %arg1: i32) -> (i32, i32, i32, i32) {
    %c0_i32 = arith.constant 0 : i32
    %c0_i32_0 = arith.constant 0 : i32
    %c0_i32_1 = arith.constant 0 : i32
    return %arg0, %arg1, %c0_i32, %c0_i32_0 : i32, i32, i32, i32
  }
  func.func @transform_1(%arg0: i32, %arg1: i32) -> (i32, i32, i32, i32) {
    %c1_i32 = arith.constant 1 : i32
    %0 = arith.addi %arg1, %c1_i32 : i32
    %c16_i32 = arith.constant 16 : i32
    %1 = arith.muli %c16_i32, %0 : i32
    %c0_i32 = arith.constant 0 : i32
    %c0_i32_0 = arith.constant 0 : i32
    %c0_i32_1 = arith.constant 0 : i32
    return %arg0, %1, %c0_i32, %c0_i32_0 : i32, i32, i32, i32
  }
  func.func @transform_2(%arg0: i32, %arg1: i32) -> (i32, i32) {
    %c0_i32 = arith.constant 0 : i32
    %c0_i32_0 = arith.constant 0 : i32
    %c0_i32_1 = arith.constant 0 : i32
    return %c0_i32, %c0_i32_0 : i32, i32
  }
  func.func @transform_3(%arg0: i32, %arg1: i32) -> (i32, i32, i32, i32) {
    %c0_i32 = arith.constant 0 : i32
    %c0_i32_0 = arith.constant 0 : i32
    %c0_i32_1 = arith.constant 0 : i32
    return %arg0, %arg1, %c0_i32, %c0_i32_0 : i32, i32, i32, i32
  }
}

</mosaic_0001>

<bundles_post_ra>
// kernel: down_skip.1
= control target key start
LH: loop header
LB: loop body
LE: loop exit
PB: predicated region body
PF: predicated region fallthrough
CT: control target
= control target key end

     0   :  { %s900_s12 = smov 0   ;;  %s902_s13 = smov 0   ;;  %s1119_s0 = inlined_call_operand.vmem [shape: f32[2,17,9,8], index: 0, kind: input, shape index: {}, may-alias: {0,1}]   ;;  %s1120_s1 = inlined_call_operand.vmem [shape: f32[2,17,9,8], index: 1, kind: input, shape index: {}, may-alias: {0,1}]   ;;  %s1121_s2 = inlined_call_operand.vmem [shape: f32[4,8], index: 2, kind: input, shape index: {}]   ;;  %s1122_s3 = inlined_call_operand.vmem [shape: f32[2,8,8,8], index: 3, kind: output, shape index: {}]  }
   0x1   :  { %s904_s14 = smov 0  }
   0x2 LB: > { %s25_s15 = sadd.s32 1, %s873_s13  ;;  %p783_p0 = scmp.ge.s32.totalorder %s877_s14, 1  ;;  %s877_s14 = sphi %s904_s14, %s13_s14   ;;  %s873_s13 = sphi %s902_s13, %s1124_s13   ;;  %s869_s12 = sphi %s900_s12, %s1123_s12  }
   0x3   : > { %p27_p1 = scmp.ge.s32.totalorder %s25_s15, 2  ;;  %p193_p2 = scmp.lt.s32.totalorder %s877_s14, 3 }
   0x5   : > { %s1126_s15 = smov (%p27_p1, %s25_s15), 0  ;;  %p194_p3 = pnand %p783_p0, %p193_p2 }
   0x6   : > { %p248_p4 = scmp.lt.s32.totalorder (!%p194_p3), %s869_s12, 1  ;;  %s879_s20 = smov (!%p194_p3), 124   ;;  %v524_v8 = vld [vmem:[%s1121_s2] sm:$0xf] (!%p194_p3)  ;;  %vm550_vm0 = vcmask (!%p194_p3), 1043456   ;;  %vm414_vm1 = vcmask (!%p194_p3), 1046528  }
   0x7   : > { %197 = sbr.rel (%p194_p3) target bundleno = 387 (0x183), region = 32  ;;  %811 = vmatprep.subr.msk.mxu0 (!%p194_p3), %vm550_vm0, %v524_v8  ;;  %825 = vmatprep.subr.msk.mxu1 (!%p194_p3), %vm550_vm0, %v524_v8  ;;  %vm525_vm2 = vcmask (!%p194_p3), 31744   ;;  %vm659_vm3 = vcmask (!%p194_p3), 64512  }
   0x8   : > { %812 = vmatpush3.msk.msra.mxu0 (!%p194_p3), %vm550_vm0, %v524_v8  ;;  %826 = vmatpush3.msk.msra.mxu1 (!%p194_p3), %vm550_vm0, %v524_v8 }
   0xe   : > { %s1128_s12 = smov (!%p248_p4, %s869_s12), 1 }
   0xf   : > { %s827_s16 = smul.u32 272, %s1128_s12  ;;  %s801_s27 = sshll.u32 %s1128_s12, 6 }
  0x10   : > { %s284_s30 = scalar_lea.vmem %s1122_s3, %s801_s27 }
  0x11   : > { %s926_s19 = scalar_lea.vmem %s1119_s0, %s827_s16  ;;  %s800_s23 = sadd.s32 256, %s827_s16 }
  0x12   : > { %v929_v0 = vld [vmem:[%s926_s19 + $0x80] sm:$0xff]  ;;  %v939_v2 = vld [vmem:[%s926_s19 + $0x90] sm:$0xff]  ;;  %s1009_s26 = scalar_lea.vmem %s1120_s1, %s800_s23  ;;  %v289_v18 = vld [vmem:[%s926_s19 + $0x18] sm:$0x1] }
  0x13   : > { %v932_v1 = vld [vmem:[%s926_s19] sm:$0xff]  ;;  %350 = vrot.lane.b32.xlu1 %v929_v0, %s879_s20  ;;  %v288_v3 = vld [vmem:[%s926_s19 + $0x10] sm:$0xff]  ;;  %v287_v19 = vld [vmem:[%s926_s19 + $0x8] sm:$0x1]  ;;  %v419_v23 = vrot.slane %v289_v18, 1  ;;  %v442_v28 = vrot.slane %v939_v2, 1 }
  0x14   : > { %334 = vrot.lane.b32.xlu0 %v932_v1, %s879_s20  ;;  %v946_v4 = vld [vmem:[%s926_s19 + $0x30] sm:$0xff]  ;;  %v949_v5 = vld [vmem:[%s926_s19 + $0x20] sm:$0xff]  ;;  %v418_v20 = vrot.slane %v288_v3, 1  ;;  %v305_v24 = vld [vmem:[%s926_s19 + $0x98] sm:$0x1]  ;;  %v415_v26 = vrot.slane %v932_v1, 1 }
  0x15   : > { %v956_v6 = vld [vmem:[%s926_s19 + $0xb0] sm:$0xff]  ;;  %v959_v7 = vld [vmem:[%s926_s19 + $0xa0] sm:$0xff]  ;;  %v291_v25 = vld [vmem:[%s926_s19 + $0x28] sm:$0x1]  ;;  %v416_v27 = vrot.slane %v287_v19, 1  ;;  %v421_v31 = vrot.slane %v949_v5, 1 }
  0x16   : > { %v969_v9 = vld [vmem:[%s926_s19 + $0xc0] sm:$0xff]  ;;  %v979_v11 = vld [vmem:[%s926_s19 + $0xd0] sm:$0xff]  ;;  %v303_v29 = vld [vmem:[%s926_s19 + $0x88] sm:$0x1]  ;;  %v443_v32 = vrot.slane %v305_v24, 1  ;;  %v420_v34 = vsel %vm414_vm1, %v418_v20, %v419_v23  ;;  %v422_v36 = vrot.slane %v291_v25, 1 }
  0x17   : > { %352 = vrot.lane.b32.xlu1 %v939_v2, %s879_s20  ;;  %v972_v10 = vld [vmem:[%s926_s19 + $0x40] sm:$0xff]  ;;  %v982_v12 = vld [vmem:[%s926_s19 + $0x50] sm:$0xff]  ;;  %v293_v30 = vld [vmem:[%s926_s19 + $0x38] sm:$0x1]  ;;  %v439_v37 = vrot.slane %v929_v0, 1  ;;  %v424_v42 = vrot.slane %v946_v4, 1  ;;  %v417_v44 = vsel %vm414_vm1, %v415_v26, %v416_v27 }
  0x18   : > { %336 = vrot.lane.b32.xlu0 %v288_v3, %s879_s20  ;;  %v989_v13 = vld [vmem:[%s926_s19 + $0x70] sm:$0xff]  ;;  %v992_v14 = vld [vmem:[%s926_s19 + $0x60] sm:$0xff]  ;;  %v309_v40 = vld [vmem:[%s926_s19 + $0xb8] sm:$0x1]  ;;  %v440_v43 = vrot.slane %v303_v29, 1  ;;  %v425_v45 = vrot.slane %v293_v30, 1  ;;  %v444_v50 = vsel %vm414_vm1, %v442_v28, %v443_v32  ;;  %v423_v52 = vsel %vm414_vm1, %v421_v31, %v422_v36 }
  0x19   : > { %v1001_v15 = vld [vmem:[%s926_s19 + $0xf0] sm:$0xff]  ;;  %v1004_v16 = vld [vmem:[%s926_s19 + $0xe0] sm:$0xff]  ;;  %v307_v41 = vld [vmem:[%s926_s19 + $0xa8] sm:$0x1]  ;;  %v448_v46 = vrot.slane %v956_v6, 1  ;;  %v445_v47 = vrot.slane %v959_v7, 1 }
  0x1a   : > { %v1016_v17 = vld [vmem:[%s1009_s26] sm:$0xff]  ;;  %v449_v54 = vrot.slane %v309_v40, 1  ;;  %v446_v55 = vrot.slane %v307_v41, 1  ;;  %v311_v59 = vld [vmem:[%s926_s19 + $0xc8] sm:$0x1]  ;;  %v451_v61 = vrot.slane %v969_v9, 1  ;;  %v441_v63 = vsel %vm414_vm1, %v439_v37, %v440_v43 }
  0x1b   : > { %340 = vrot.lane.b32.xlu1 %v946_v4, %s879_s20  ;;  %v295_v60 = vld [vmem:[%s926_s19 + $0x48] sm:$0x1]  ;;  %v427_v62 = vrot.slane %v972_v10, 1  ;;  %v297_v27 = vld [vmem:[%s926_s19 + $0x58] sm:$0x1]  ;;  %v430_v32 = vrot.slane %v982_v12, 1 }
  0x1c   : > { %338 = vrot.lane.b32.xlu0 %v949_v5, %s879_s20  ;;  %v450_v18 = vsel %vm414_vm1, %v448_v46, %v449_v54  ;;  %v447_v19 = vsel %vm414_vm1, %v445_v47, %v446_v55  ;;  %v313_v31 = vld [vmem:[%s926_s19 + $0xd8] sm:$0x1]  ;;  %v299_v40 = vld [vmem:[%s926_s19 + $0x68] sm:$0x1]  ;;  %v454_v41 = vrot.slane %v979_v11, 1 }
  0x1d   : > { %v455_v43 = vrot.slane %v313_v31, 1  ;;  %v317_v55 = vld [vmem:[%s926_s19 + $0xf8] sm:$0x1] }
  0x1f   : > { %356 = vrot.lane.b32.xlu1 %v956_v6, %s879_s20 }
  0x20   : > { %354 = vrot.lane.b32.xlu0 %v959_v7, %s879_s20 }
  0x23   : > { %358 = vrot.lane.b32.xlu1 %v969_v9, %s879_s20 }
  0x24   : > { %342 = vrot.lane.b32.xlu0 %v972_v10, %s879_s20 }
  0x27   : > { %360 = vrot.lane.b32.xlu1 %v979_v11, %s879_s20 }
  0x28   : > { %344 = vrot.lane.b32.xlu0 %v982_v12, %s879_s20 }
  0x2b   : > { %348 = vrot.lane.b32.xlu1 %v989_v13, %s879_s20 }
  0x2c   : > { %346 = vrot.lane.b32.xlu0 %v992_v14, %s879_s20 }
  0x2f   : > { %364 = vrot.lane.b32.xlu1 %v1001_v15, %s879_s20 }
  0x30   : > { %362 = vrot.lane.b32.xlu0 %v1004_v16, %s879_s20 }
  0x34   : > { %498 = vrot.lane.b32.xlu0 %v1016_v17, %s879_s20 }
  0x85   : > { %v351_v21 = vpop.permute.xlu1 %350 }
  0x86   : > { %v335_v22 = vpop.permute.xlu0 %334  ;;  %v390_v56 = vadd.f32 %v351_v21, %v929_v0  ;;  %v452_v21 = vrot.slane %v311_v59, 1  ;;  %v456_v59 = vsel %vm414_vm1, %v454_v41, %v455_v43 }
  0x87   : > { %v382_v38 = vadd.f32 %v335_v22, %v932_v1  ;;  %v426_v1 = vsel %vm414_vm1, %v424_v42, %v425_v45  ;;  %v428_v22 = vrot.slane %v295_v60, 1  ;;  %v436_v42 = vrot.slane %v989_v13, 1 }
  0x88   : > { %v1052_v23 = vadd.f32 %v441_v63, %v390_v56  ;;  %v315_v56 = vld [vmem:[%s926_s19 + $0xe8] sm:$0x1] }
  0x89   : > { %v353_v33 = vpop.permute.xlu1 %352  ;;  %v479_v57 = vadd.f32 %v417_v44, %v382_v38 }
  0x8a   : > { %v337_v35 = vpop.permute.xlu0 %336  ;;  %v391_v48 = vadd.f32 %v353_v33, %v939_v2  ;;  %v453_v33 = vsel %vm414_vm1, %v451_v61, %v452_v21  ;;  %v503_v21 = vrot.slane %v1016_v17, 1 }
  0x8b   : > { %v383_v39 = vadd.f32 %v337_v35, %v288_v3  ;;  %v431_v35 = vrot.slane %v297_v27, 1 }
  0x8c   : > { %v488_v2 = vadd.f32 %v444_v50, %v391_v48 }
  0x8d   : > { %v480_v49 = vadd.f32 %v420_v34, %v383_v39  ;;  %v341_v51 = vpop.permute.xlu1 %340  ;;  %v301_v39 = vld [vmem:[%s926_s19 + $0x78] sm:$0x1] }
  0x8e   : > { %v339_v53 = vpop.permute.xlu0 %338  ;;  %v385_v3 = vadd.f32 %v341_v51, %v946_v4  ;;  %v512_v30 = vadd.f32 %v488_v2, %v1052_v23  ;;  %v437_v50 = vrot.slane %v301_v39, 1  ;;  %v434_v51 = vrot.slane %v299_v40, 1 }
  0x8f   : > { %v384_v58 = vadd.f32 %v339_v53, %v949_v5  ;;  %v508_v0 = vadd.f32 %v480_v49, %v479_v57  ;;  %v460_v57 = vrot.slane %v1001_v15, 1  ;;  %v461_v2 = vrot.slane %v317_v55, 1 }
  0x90   : > { %v482_v4 = vadd.f32 %v426_v1, %v385_v3  ;;  %v458_v3 = vrot.slane %v315_v56, 1 }
  0x91   : > { %v481_v8 = vadd.f32 %v423_v52, %v384_v58  ;;  %v357_v5 = vpop.permute.xlu1 %356  ;;  %v457_v58 = vrot.slane %v1004_v16, 1 }
  0x92   : > { %v355_v20 = vpop.permute.xlu0 %354  ;;  %v393_v24 = vadd.f32 %v357_v5, %v956_v6  ;;  %v429_v6 = vsel %vm414_vm1, %v427_v62, %v428_v22  ;;  %v438_v62 = vsel %vm414_vm1, %v436_v42, %v437_v50 }
  0x93   : > { %v392_v25 = vadd.f32 %v355_v20, %v959_v7  ;;  %v516_v26 = vadd.f32 %v508_v0, %v481_v8  ;;  %v509_v44 = vadd.f32 %v482_v4, %v481_v8  ;;  %v496_v8 = vld [vmem:[%s1009_s26 + $0x8] sm:$0x1] }
  0x94   : > { %v490_v28 = vadd.f32 %v450_v18, %v393_v24  ;;  %v504_v22 = vrot.slane %v496_v8, 1  ;;  %v462_v24 = vsel %vm414_vm1, %v460_v57, %v461_v2 }
  0x95   : > { %v489_v29 = vadd.f32 %v447_v19, %v392_v25  ;;  %813 = vmatprep.mubr.msk.f32.mxu0 %vm525_vm2, %v516_v26  ;;  %v359_v34 = vpop.permute.xlu1 %358  ;;  %v459_v26 = vsel %vm414_vm1, %v457_v58, %v458_v3 }
  0x96   : > { %v343_v7 = vpop.permute.xlu0 %342  ;;  %v394_v36 = vadd.f32 %v359_v34, %v969_v9  ;;  %v433_v9 = vrot.slane %v992_v14, 1 }
  0x97   : > { %v386_v37 = vadd.f32 %v343_v7, %v972_v10  ;;  %v520_v38 = vadd.f32 %v512_v30, %v489_v29  ;;  %v513_v45 = vadd.f32 %v490_v28, %v489_v29  ;;  %v432_v10 = vsel %vm414_vm1, %v430_v32, %v431_v35 }
  0x98   : > { %v491_v46 = vadd.f32 %v453_v33, %v394_v36  ;;  %v505_v33 = vsel %vm414_vm1, %v503_v21, %v504_v22 }
  0x99   : > { %v483_v47 = vadd.f32 %v429_v6, %v386_v37  ;;  %819 = vmatprep.mubr.msk.f32.mxu1 %vm525_vm2, %v520_v38  ;;  %v361_v48 = vpop.permute.xlu1 %360 }
  0x9a   : > { %v345_v49 = vpop.permute.xlu0 %344  ;;  %v521_v52 = vadd.f32 %v513_v45, %v491_v46  ;;  %v395_v60 = vadd.f32 %v361_v48, %v979_v11 }
  0x9b   : > { %v517_v53 = vadd.f32 %v509_v44, %v483_v47  ;;  %v387_v54 = vadd.f32 %v345_v49, %v982_v12  ;;  %v435_v12 = vsel %vm414_vm1, %v433_v9, %v434_v51 }
  0x9c   : > { %820 = vmatmul.mubr.msk.f32.vlgmr.msra.gmra.mrb[0].mxu1 %vm525_vm2, %v521_v52  ;;  %v492_v5 = vadd.f32 %v456_v59, %v395_v60 }
  0x9d   : > { %v484_v61 = vadd.f32 %v432_v10, %v387_v54  ;;  %814 = vmatmul.mubr.msk.f32.vlgmr.msra.gmra.mrb[0].mxu0 %vm525_vm2, %v517_v53  ;;  %v349_v63 = vpop.permute.xlu1 %348 }
  0x9e   : > { %v347_v1 = vpop.permute.xlu0 %346  ;;  %v389_v0 = vadd.f32 %v349_v63, %v989_v13 }
  0x9f   : > { %v388_v18 = vadd.f32 %v347_v1, %v992_v14  ;;  %v510_v11 = vadd.f32 %v484_v61, %v483_v47  ;;  %v514_v14 = vadd.f32 %v492_v5, %v491_v46 }
  0xa0   : > { %v486_v19 = vadd.f32 %v438_v62, %v389_v0 }
  0xa1   : > { %v485_v20 = vadd.f32 %v435_v12, %v388_v18  ;;  %v365_v25 = vpop.permute.xlu1 %364 }
  0xa2   : > { %v363_v27 = vpop.permute.xlu0 %362  ;;  %v397_v29 = vadd.f32 %v365_v25, %v1001_v15 }
  0xa3   : > { %v511_v4 = vadd.f32 %v486_v19, %v485_v20  ;;  %v518_v28 = vadd.f32 %v510_v11, %v485_v20  ;;  %v396_v13 = vadd.f32 %v363_v27, %v1004_v16 }
  0xa4   : > { %v494_v31 = vadd.f32 %v462_v24, %v397_v29 }
  0xa5   : > { %v519_v30 = vadd.f32 %v511_v4, %v1052_v23  ;;  %v493_v32 = vadd.f32 %v459_v26, %v396_v13  ;;  %816 = vmatprep.mubr.msk.f32.mxu0 %vm525_vm2, %v518_v28 }
  0xa6   : > { %v499_v34 = vpop.permute.xlu0 %498 }
  0xa7   : > { %v522_v6 = vadd.f32 %v514_v14, %v493_v32  ;;  %v501_v7 = vadd.f32 %v499_v34, %v1016_v17  ;;  %817 = vmatmul.mubr.msk.f32.gmra.mrb[2].mxu0 %vm525_vm2, %v519_v30  ;;  %v515_v35 = vadd.f32 %v494_v31, %v493_v32 }
  0xa9   : > { %v507_v15 = vadd.f32 %v505_v33, %v501_v7  ;;  %822 = vmatprep.mubr.msk.f32.mxu1 %vm525_vm2, %v522_v6 }
  0xab   : > { %v523_v16 = vadd.f32 %v515_v35, %v507_v15 }
  0xad   : > { %823 = vmatmul.mubr.msk.f32.gmra.mrb[2].mxu1 %vm525_vm2, %v523_v16 }
 0x16f   : > { %v821_v36 = vpop.f32.mrb[0].mxu1 }
 0x170   : > { %v815_v23 = vpop.f32.mrb[0].mxu0  ;;  %665 = vst.msk [vmem:[%s284_s30 + $0x28] sm:$0xff] %vm659_vm3, %v821_v36  ;;  %v640_v37 = vpop.f32.mrb[1].mxu1 }
 0x171   : > { %661 = vst.msk [vmem:[%s284_s30 + $0x8] sm:$0xff] %vm659_vm3, %v815_v23  ;;  %v620_v17 = vpop.f32.mrb[1].mxu0  ;;  %664 = vst.msk [vmem:[%s284_s30 + $0x20] sm:$0xff] %vm659_vm3, %v640_v37 }
 0x172   : > { %660 = vst.msk [vmem:[%s284_s30] sm:$0xff] %vm659_vm3, %v620_v17 }
 0x17a   : > { %v818_v38 = vpop.f32.mrb[2].mxu0 }
 0x17b   : > { %663 = vst.msk [vmem:[%s284_s30 + $0x18] sm:$0xff] %vm659_vm3, %v818_v38  ;;  %v630_v39 = vpop.f32.mrb[3].mxu0 }
 0x17c   : > { %662 = vst.msk [vmem:[%s284_s30 + $0x10] sm:$0xff] %vm659_vm3, %v630_v39 }
 0x180   : > { %v824_v40 = vpop.f32.mrb[2].mxu1 }
 0x181   : > { %667 = vst.msk [vmem:[%s284_s30 + $0x38] sm:$0xff] %vm659_vm3, %v824_v40  ;;  %v650_v41 = vpop.f32.mrb[3].mxu1 }
 0x182   : > { %666 = vst.msk [vmem:[%s284_s30 + $0x30] sm:$0xff] %vm659_vm3, %v650_v41 }
 0x183 PF: > { %s13_s14 = sadd.s32 1, %s877_s14   ;;  %s1123_s12 = smov %s873_s13 }
 0x184   : > { %p10_p5 = scmp.ge.s32.totalorder %s13_s14, 4   ;;  %s1124_s13 = smov %s1126_s15 }
 0x186   :  { %12 = sbr.rel (!%p10_p5) target bundleno = 2 (0x2), region = 65 }

</bundles_post_ra>
